<compile_context>
chip_gen: v7x
topology: tpu7x:2x2x1
jax: 0.10.0
libtpu: 0.0.40
codegen_flags: <defaults>
</compile_context>

<pallas_src>
import math
from functools import partial

import jax
import jax.numpy as jnp
from jax import lax
from jax.experimental import pallas as pl
from jax.experimental.pallas import tpu as pltpu

_BBOX_XFORM_CLIP = math.log(1000.0 / 16.0)


# ----------------------------------------------------------------------------
# Pallas kernel: 3x3 conv (one K=9C matmul) + ReLU + fused cls/bbox 1x1 heads
#                + sigmoid + anchor-box regression decode.  One grid step
#                handles TH feature-map rows (TN = TH*W lanes).
# ----------------------------------------------------------------------------
def _rpn_head_kernel(xt_ref, wconv_ref, bconv_ref, whead_ref, bhead_ref,
                     anch_ref, scores_ref, props_ref, *, W, A, TN):
    C = bconv_ref.shape[0]

    # w-coordinate of every lane (p = r*W + w) -> masks for the conv's zero
    # padding in the W direction (H padding is baked into the halo rows).
    w_of = lax.broadcasted_iota(jnp.int32, (C, TN), 1) % W
    left_ok = w_of > 0           # reading the (w-1) neighbour is valid
    right_ok = w_of < (W - 1)    # reading the (w+1) neighbour is valid

    # Build the (9C, TN) im2col block from static lane slices of the single
    # (row-halo + 1-lane-pad) feature tile: no 9x duplicated HBM input.
    taps = []
    for ky in range(3):
        for kx in range(3):
            dx = kx - 1
            start = 1 + ky * W + dx            # +1 for the lane pad element
            t = xt_ref[0, :, start:start + TN]             # (C, TN) bf16
            if dx == -1:
                t = jnp.where(left_ok, t, jnp.zeros_like(t))
            elif dx == 1:
                t = jnp.where(right_ok, t, jnp.zeros_like(t))
            taps.append(t)
    xcol = jnp.concatenate(taps, axis=0)                   # (9C, TN) bf16

    # 3x3 conv == ONE K=9C matmul on the MXU (bf16 in, f32 accum) + bias + ReLU.
    rfeat = jnp.dot(wconv_ref[...], xcol, preferred_element_type=jnp.float32)
    rfeat = jnp.maximum(rfeat + bconv_ref[...], 0.0)       # (C, TN) f32

    # Fused 1x1 heads: rows [0:A] = cls logits, rows [A:5A] = (tx|ty|tw|th)*A.
    head = jnp.dot(whead_ref[...], rfeat.astype(whead_ref.dtype),
                   preferred_element_type=jnp.float32) + bhead_ref[...]

    scores_ref[...] = jax.nn.sigmoid(head[0:A, :])         # (A, TN), lane-dense

    tx = head[1 * A:2 * A, :]
    ty = head[2 * A:3 * A, :]
    tw = jnp.minimum(head[3 * A:4 * A, :], _BBOX_XFORM_CLIP)
    th = jnp.minimum(head[4 * A:5 * A, :], _BBOX_XFORM_CLIP)

    ax1 = anch_ref[0 * A:1 * A, :]
    ay1 = anch_ref[1 * A:2 * A, :]
    ax2 = anch_ref[2 * A:3 * A, :]
    ay2 = anch_ref[3 * A:4 * A, :]
    aw = ax2 - ax1
    ah = ay2 - ay1
    acx = ax1 + 0.5 * aw
    acy = ay1 + 0.5 * ah

    pcx = tx * aw + acx
    pcy = ty * ah + acy
    pw = jnp.exp(tw) * aw
    ph = jnp.exp(th) * ah

    # Lane-dense slice stores (no concatenate of the 4 coordinate blocks).
    props_ref[0 * A:1 * A, :] = pcx - 0.5 * pw
    props_ref[1 * A:2 * A, :] = pcy - 0.5 * ph
    props_ref[2 * A:3 * A, :] = pcx + 0.5 * pw
    props_ref[3 * A:4 * A, :] = pcy + 0.5 * ph


# ----------------------------------------------------------------------------
# Plain-JAX glue
# ----------------------------------------------------------------------------
def generate_anchors(image_shape, feat_shape, scales, aspect_ratios):
    grid_h, grid_w = feat_shape[-2], feat_shape[-1]
    image_h, image_w = image_shape[-2], image_shape[-1]
    stride_h = image_h // grid_h
    stride_w = image_w // grid_w

    scales = jnp.asarray(scales, jnp.float32)
    ar = jnp.asarray(aspect_ratios, jnp.float32)
    h_ratios = jnp.sqrt(ar)
    w_ratios = 1.0 / h_ratios
    ws = (w_ratios[:, None] * scales[None, :]).reshape(-1)
    hs = (h_ratios[:, None] * scales[None, :]).reshape(-1)
    base_anchors = jnp.round(jnp.stack([-ws, -hs, ws, hs], axis=1) / 2.0)

    shifts_x = jnp.arange(grid_w, dtype=jnp.float32) * stride_w
    shifts_y = jnp.arange(grid_h, dtype=jnp.float32) * stride_h
    sy, sx = jnp.meshgrid(shifts_y, shifts_x, indexing="ij")
    sx = sx.reshape(-1)
    sy = sy.reshape(-1)
    shifts = jnp.stack([sx, sy, sx, sy], axis=1)
    anchors = (shifts[:, None, :] + base_anchors[None, :, :]).reshape(-1, 4)
    return anchors


def _nms_keep(boxes, keep_init, iou_thresh):
    """Greedy NMS over boxes already sorted by descending score."""
    n = boxes.shape[0]
    area = (boxes[:, 2] - boxes[:, 0]) * (boxes[:, 3] - boxes[:, 1])
    lt = jnp.maximum(boxes[:, None, :2], boxes[None, :, :2])
    rb = jnp.minimum(boxes[:, None, 2:], boxes[None, :, 2:])
    wh = jnp.clip(rb - lt, 0.0)
    inter = wh[..., 0] * wh[..., 1]
    iou = inter / (area[:, None] + area[None, :] - inter + 1e-9)
    idx = jnp.arange(n)

    def body(i, keep):
        suppress = keep[i] & (iou[i] > iou_thresh) & (idx > i)
        return keep & (~suppress)

    return lax.fori_loop(0, n, body, keep_init)


def filter_proposals(proposals, cls_scores, image_shape, cfg):
    n = cls_scores.shape[0]
    k_pre = min(cfg["rpn_test_prenms_topk"], n)
    top_scores, top_idx = lax.top_k(cls_scores, k_pre)
    props = proposals[top_idx]

    ih, iw = image_shape[-2], image_shape[-1]
    x1 = jnp.clip(props[:, 0], 0.0, float(iw))
    y1 = jnp.clip(props[:, 1], 0.0, float(ih))
    x2 = jnp.clip(props[:, 2], 0.0, float(iw))
    y2 = jnp.clip(props[:, 3], 0.0, float(ih))
    props = jnp.stack([x1, y1, x2, y2], axis=1)

    min_size = 16.0
    valid = ((x2 - x1) >= min_size) & ((y2 - y1) >= min_size)

    keep = _nms_keep(props, valid, cfg["rpn_nms_threshold"])
    masked_scores = jnp.where(keep, top_scores, -1.0)

    k_post = min(cfg["rpn_test_topk"], k_pre)
    out_scores, idx2 = lax.top_k(masked_scores, k_post)
    out_props = props[idx2]
    # Fixed-shape substitute for variable-length output: rows with
    # score == -1.0 are padding (suppressed / filtered boxes).
    return out_props, out_scores


def _pick_tile_rows(H, W):
    """Largest row-tile TH dividing H with (TH*W) % 128 == 0, else whole H."""
    for th in range(H // 2, 0, -1):
        if H % th == 0 and (th * W) % 128 == 0:
            return th
    return H


def _prepare_weights(params, C, A):
    # 3x3 conv (C_out, C_in, 3, 3) -> (C_out, 9*C_in), K ordered (ky, kx, c_in).
    w2 = jnp.transpose(params["conv_w"], (0, 2, 3, 1)).reshape(C, 9 * C)
    bconv = params["conv_b"].reshape(C, 1).astype(jnp.float32)
    # 1x1 cls head (A, C, 1, 1) -> (A, C).
    wcls = params["cls_w"].reshape(A, C)
    bcls = params["cls_b"].reshape(A)
    # 1x1 bbox head: PyTorch channel order a*4 + c -> rows c*A + a
    # ([tx|ty|tw|th] blocks); the BIAS is permuted identically (fix).
    wbox = params["box_w"].reshape(A, 4, C).transpose(1, 0, 2).reshape(4 * A, C)
    bbox = params["box_b"].reshape(A, 4).transpose(1, 0).reshape(4 * A)
    whead = jnp.concatenate([wcls, wbox], axis=0)               # (5A, C)
    bhead = jnp.concatenate([bcls, bbox], axis=0).reshape(5 * A, 1)
    return (w2.astype(jnp.bfloat16), bconv,
            whead.astype(jnp.bfloat16), bhead.astype(jnp.float32))


def init_rpn_params(key, in_channels, num_anchors):
    C, A = in_channels, num_anchors
    k1, k2, k3 = jax.random.split(key, 3)
    return dict(
        conv_w=0.01 * jax.random.normal(k1, (C, C, 3, 3), jnp.float32),
        conv_b=jnp.zeros((C,), jnp.float32),
        cls_w=0.01 * jax.random.normal(k2, (A, C, 1, 1), jnp.float32),
        cls_b=jnp.zeros((A,), jnp.float32),
        box_w=0.01 * jax.random.normal(k3, (4 * A, C, 1, 1), jnp.float32),
        box_b=jnp.zeros((4 * A,), jnp.float32),
    )


def rpn_forward(image, feat, params, scales, aspect_ratios, cfg):
    """Inference forward pass of RegionProposalNetwork (batch size 1)."""
    _, C, H, W = feat.shape
    A = len(scales) * len(aspect_ratios)
    HW = H * W

    TH = _pick_tile_rows(H, W)
    n_tiles = H // TH
    TN = TH * W
    lane_w = (TH + 2) * W + 2     # halo rows + 1 pad lane each side

    # Single bf16 copy of the feature map (not a 9x im2col stack); each tile
    # slab carries only its 2 halo rows (~(TH+2)/TH duplication).
    x = feat[0].astype(jnp.bfloat16)                        # (C, H, W)
    xpad = jnp.pad(x, ((0, 0), (1, 1), (0, 0)))             # (C, H+2, W)
    tiles = []
    for i in range(n_tiles):
        slab = xpad[:, i * TH:i * TH + TH + 2, :].reshape(C, (TH + 2) * W)
        tiles.append(jnp.pad(slab, ((0, 0), (1, 1))))       # 1 zero lane each side
    xt = jnp.stack(tiles, axis=0)                           # (n_tiles, C, lane_w)

    w2, bconv, whead, bhead = _prepare_weights(params, C, A)

    # Anchors in the kernel layout: rows = [x1|y1|x2|y2] blocks of height A,
    # lanes = flattened H*W.
    anchors = generate_anchors(image.shape, feat.shape, scales, aspect_ratios)
    anch_lay = anchors.reshape(HW, A, 4).transpose(2, 1, 0).reshape(4 * A, HW)

    kernel = partial(_rpn_head_kernel, W=W, A=A, TN=TN)
    scores_lay, props_lay = pl.pallas_call(
        kernel,
        grid=(n_tiles,),
        in_specs=[
            pl.BlockSpec((1, C, lane_w), lambda i: (i, 0, 0)),   # feature tile
            pl.BlockSpec((C, 9 * C), lambda i: (0, 0)),          # conv W (resident)
            pl.BlockSpec((C, 1), lambda i: (0, 0)),              # conv bias
            pl.BlockSpec((5 * A, C), lambda i: (0, 0)),          # fused head W
            pl.BlockSpec((5 * A, 1), lambda i: (0, 0)),          # fused head bias
            pl.BlockSpec((4 * A, TN), lambda i: (0, i)),         # anchors tile
        ],
        out_specs=(
            pl.BlockSpec((A, TN), lambda i: (0, i)),             # scores
            pl.BlockSpec((4 * A, TN), lambda i: (0, i)),         # proposals
        ),
        out_shape=(jax.ShapeDtypeStruct((A, HW), jnp.float32),
                   jax.ShapeDtypeStruct((4 * A, HW), jnp.float32)),
        compiler_params=pltpu.CompilerParams(
            dimension_semantics=("parallel",),
            vmem_limit_bytes=64 * 1024 * 1024),
    )(xt, w2, bconv, whead, bhead, anch_lay)

    # Back to the PyTorch flattening order ((h*W + w)*A + a).
    cls_scores = scores_lay.T.reshape(-1)                                  # (HW*A,)
    proposals = props_lay.reshape(4, A, HW).transpose(2, 1, 0).reshape(HW * A, 4)

    proposals, scores = filter_proposals(proposals, cls_scores, image.shape, cfg)
    return {"proposals": proposals, "scores": scores}


# ----------------------------------------------------------------------------
if __name__ == "__main__":
    in_channels = 16
    H = W = 16
    img_h = img_w = 128
    scales = (8.0, 16.0, 32.0)
    aspect_ratios = (0.5, 1.0, 2.0)
    num_anchors = len(scales) * len(aspect_ratios)

    model_config = dict(
        rpn_bg_threshold=0.3,
        rpn_fg_threshold=0.7,
        rpn_nms_threshold=0.7,
        rpn_batch_size=256,
        rpn_pos_fraction=0.5,
        rpn_train_prenms_topk=2000,
        rpn_test_prenms_topk=256,
        rpn_train_topk=1000,
        rpn_test_topk=64,
    )

    key = jax.random.PRNGKey(0)
    k_img, k_feat, k_par = jax.random.split(key, 3)
    image = jax.random.normal(k_img, (1, 3, img_h, img_w), jnp.float32)
    feat = jax.random.normal(k_feat, (1, in_channels, H, W), jnp.float32)
    params = init_rpn_params(k_par, in_channels, num_anchors)

    fwd = jax.jit(lambda im, ft, pr: rpn_forward(im, ft, pr, scales,
                                                 aspect_ratios, model_config))
    out = fwd(image, feat, params)
    jax.block_until_ready(out)
    assert out["proposals"].shape == (model_config["rpn_test_topk"], 4)
    assert out["scores"].shape == (model_config["rpn_test_topk"],)
    assert bool(jnp.all(jnp.isfinite(out["proposals"])))
    print("KERNEL_OK")
</pallas_src>

<mosaic_0001>
module attributes {stable_mosaic.version = 11 : i64} {
  func.func @_rpn_head_kernel(%arg0: i32, %arg1: memref<1x16x162xbf16, #tpu.memory_space<vmem>>, %arg2: memref<16x144xbf16, #tpu.memory_space<vmem>>, %arg3: memref<16x1xf32, #tpu.memory_space<vmem>>, %arg4: memref<45x16xbf16, #tpu.memory_space<vmem>>, %arg5: memref<45x1xf32, #tpu.memory_space<vmem>>, %arg6: memref<36x128xf32, #tpu.memory_space<vmem>>, %arg7: memref<9x128xf32, #tpu.memory_space<vmem>>, %arg8: memref<36x128xf32, #tpu.memory_space<vmem>>) attributes {dimension_semantics = [#tpu.dimension_semantics<parallel>], iteration_bounds = array<i64: 2>, scalar_prefetch = 0 : i64, scratch_operands = 0 : i64, tpu.core_type = #tpu.core_type<tc>, window_params = [{transform_indices = @transform_0, window_bounds = array<i64: 1, 16, 162>}, {pipeline_mode = #tpu.pipeline_mode<synchronous>, transform_indices = @transform_1, window_bounds = array<i64: 16, 144>}, {pipeline_mode = #tpu.pipeline_mode<synchronous>, transform_indices = @transform_2, window_bounds = array<i64: 16, 1>}, {pipeline_mode = #tpu.pipeline_mode<synchronous>, transform_indices = @transform_3, window_bounds = array<i64: 45, 16>}, {pipeline_mode = #tpu.pipeline_mode<synchronous>, transform_indices = @transform_4, window_bounds = array<i64: 45, 1>}, {transform_indices = @transform_5, window_bounds = array<i64: 36, 128>}, {transform_indices = @transform_6, window_bounds = array<i64: 9, 128>}, {transform_indices = @transform_7, window_bounds = array<i64: 36, 128>}]} {
    %0 = tpu.iota {dimensions = array<i32: 1>} : vector<16x128xi32>
    %c16_i32 = arith.constant 16 : i32
    %c0_i32 = arith.constant 0 : i32
    %1 = arith.cmpi eq, %c16_i32, %c0_i32 : i32
    %c1_i32 = arith.constant 1 : i32
    %2 = arith.select %1, %c1_i32, %c16_i32 : i32
    %3 = vector.broadcast %2 : i32 to vector<16x128xi32>
    %4 = arith.remsi %0, %3 : vector<16x128xi32>
    %c0_i32_0 = arith.constant 0 : i32
    %5 = vector.broadcast %c0_i32_0 : i32 to vector<16x128xi32>
    %6 = arith.cmpi ne, %4, %5 : vector<16x128xi32>
    %c0_i32_1 = arith.constant 0 : i32
    %7 = vector.broadcast %c0_i32_1 : i32 to vector<16x128xi32>
    %8 = arith.cmpi slt, %4, %7 : vector<16x128xi32>
    %c0_i32_2 = arith.constant 0 : i32
    %9 = arith.cmpi slt, %2, %c0_i32_2 : i32
    %10 = vector.broadcast %9 : i1 to vector<16x128xi1>
    %11 = vector.broadcast %10 : vector<16x128xi1> to vector<16x128xi1>
    %12 = arith.xori %8, %11 : vector<16x128xi1>
    %13 = arith.andi %12, %6 : vector<16x128xi1>
    %14 = vector.broadcast %2 : i32 to vector<16x128xi32>
    %15 = arith.addi %4, %14 : vector<16x128xi32>
    %16 = arith.select %13, %15, %4 : vector<16x128xi1>, vector<16x128xi32>
    %c0_i32_3 = arith.constant 0 : i32
    %17 = vector.broadcast %c0_i32_3 : i32 to vector<16x128xi32>
    %18 = arith.cmpi sgt, %16, %17 : vector<16x128xi32>
    %c15_i32 = arith.constant 15 : i32
    %19 = vector.broadcast %c15_i32 : i32 to vector<16x128xi32>
    %20 = arith.cmpi slt, %16, %19 : vector<16x128xi32>
    %c0 = arith.constant 0 : index
    %c0_4 = arith.constant 0 : index
    %c0_5 = arith.constant 0 : index
    %21 = vector.load %arg1[%c0, %c0_4, %c0_5] : memref<1x16x162xbf16, #tpu.memory_space<vmem>>, vector<1x16x128xbf16>
    %22 = vector.shape_cast %21 : vector<1x16x128xbf16> to vector<16x128xbf16>
    %cst = arith.constant 0.000000e+00 : bf16
    %23 = vector.broadcast %cst : bf16 to vector<16x128xbf16>
    %24 = arith.select %18, %22, %23 : vector<16x128xi1>, vector<16x128xbf16>
    %c0_6 = arith.constant 0 : index
    %c0_7 = arith.constant 0 : index
    %c1 = arith.constant 1 : index
    %25 = vector.load %arg1[%c0_6, %c0_7, %c1] : memref<1x16x162xbf16, #tpu.memory_space<vmem>>, vector<1x16x128xbf16>
    %26 = vector.shape_cast %25 : vector<1x16x128xbf16> to vector<16x128xbf16>
    %c0_8 = arith.constant 0 : index
    %c0_9 = arith.constant 0 : index
    %c2 = arith.constant 2 : index
    %27 = vector.load %arg1[%c0_8, %c0_9, %c2] : memref<1x16x162xbf16, #tpu.memory_space<vmem>>, vector<1x16x128xbf16>
    %28 = vector.shape_cast %27 : vector<1x16x128xbf16> to vector<16x128xbf16>
    %cst_10 = arith.constant 0.000000e+00 : bf16
    %29 = vector.broadcast %cst_10 : bf16 to vector<16x128xbf16>
    %30 = arith.select %20, %28, %29 : vector<16x128xi1>, vector<16x128xbf16>
    %c0_11 = arith.constant 0 : index
    %c0_12 = arith.constant 0 : index
    %c16 = arith.constant 16 : index
    %31 = vector.load %arg1[%c0_11, %c0_12, %c16] : memref<1x16x162xbf16, #tpu.memory_space<vmem>>, vector<1x16x128xbf16>
    %32 = vector.shape_cast %31 : vector<1x16x128xbf16> to vector<16x128xbf16>
    %cst_13 = arith.constant 0.000000e+00 : bf16
    %33 = vector.broadcast %cst_13 : bf16 to vector<16x128xbf16>
    %34 = arith.select %18, %32, %33 : vector<16x128xi1>, vector<16x128xbf16>
    %c0_14 = arith.constant 0 : index
    %c0_15 = arith.constant 0 : index
    %c17 = arith.constant 17 : index
    %35 = vector.load %arg1[%c0_14, %c0_15, %c17] : memref<1x16x162xbf16, #tpu.memory_space<vmem>>, vector<1x16x128xbf16>
    %36 = vector.shape_cast %35 : vector<1x16x128xbf16> to vector<16x128xbf16>
    %c0_16 = arith.constant 0 : index
    %c0_17 = arith.constant 0 : index
    %c18 = arith.constant 18 : index
    %37 = vector.load %arg1[%c0_16, %c0_17, %c18] : memref<1x16x162xbf16, #tpu.memory_space<vmem>>, vector<1x16x128xbf16>
    %38 = vector.shape_cast %37 : vector<1x16x128xbf16> to vector<16x128xbf16>
    %cst_18 = arith.constant 0.000000e+00 : bf16
    %39 = vector.broadcast %cst_18 : bf16 to vector<16x128xbf16>
    %40 = arith.select %20, %38, %39 : vector<16x128xi1>, vector<16x128xbf16>
    %c0_19 = arith.constant 0 : index
    %c0_20 = arith.constant 0 : index
    %c32 = arith.constant 32 : index
    %41 = vector.load %arg1[%c0_19, %c0_20, %c32] : memref<1x16x162xbf16, #tpu.memory_space<vmem>>, vector<1x16x128xbf16>
    %42 = vector.shape_cast %41 : vector<1x16x128xbf16> to vector<16x128xbf16>
    %cst_21 = arith.constant 0.000000e+00 : bf16
    %43 = vector.broadcast %cst_21 : bf16 to vector<16x128xbf16>
    %44 = arith.select %18, %42, %43 : vector<16x128xi1>, vector<16x128xbf16>
    %c0_22 = arith.constant 0 : index
    %c0_23 = arith.constant 0 : index
    %c33 = arith.constant 33 : index
    %45 = vector.load %arg1[%c0_22, %c0_23, %c33] : memref<1x16x162xbf16, #tpu.memory_space<vmem>>, vector<1x16x128xbf16>
    %46 = vector.shape_cast %45 : vector<1x16x128xbf16> to vector<16x128xbf16>
    %c0_24 = arith.constant 0 : index
    %c0_25 = arith.constant 0 : index
    %c34 = arith.constant 34 : index
    %47 = vector.load %arg1[%c0_24, %c0_25, %c34] : memref<1x16x162xbf16, #tpu.memory_space<vmem>>, vector<1x16x128xbf16>
    %48 = vector.shape_cast %47 : vector<1x16x128xbf16> to vector<16x128xbf16>
    %cst_26 = arith.constant 0.000000e+00 : bf16
    %49 = vector.broadcast %cst_26 : bf16 to vector<16x128xbf16>
    %50 = arith.select %20, %48, %49 : vector<16x128xi1>, vector<16x128xbf16>
    %51 = tpu.concatenate %24, %26, %30, %34, %36, %40, %44, %46, %50 in 0 : vector<16x128xbf16>, vector<16x128xbf16>, vector<16x128xbf16>, vector<16x128xbf16>, vector<16x128xbf16>, vector<16x128xbf16>, vector<16x128xbf16>, vector<16x128xbf16>, vector<16x128xbf16> -> vector<144x128xbf16>
    %c0_27 = arith.constant 0 : index
    %c0_28 = arith.constant 0 : index
    %52 = vector.load %arg2[%c0_27, %c0_28] : memref<16x144xbf16, #tpu.memory_space<vmem>>, vector<16x144xbf16>
    %cst_29 = arith.constant dense<0.000000e+00> : vector<16x128xf32>
    %53 = tpu.matmul %52, %51, %cst_29 {dimension_numbers = #tpu.dot_dimension_numbers<[1], [0], [0], [1], [0, 0, 1, 1], [], []>} : vector<16x144xbf16>, vector<144x128xbf16>, vector<16x128xf32> -> vector<16x128xf32>
    %c0_30 = arith.constant 0 : index
    %c0_31 = arith.constant 0 : index
    %54 = vector.load %arg3[%c0_30, %c0_31] : memref<16x1xf32, #tpu.memory_space<vmem>>, vector<16x1xf32>
    %55 = vector.broadcast %54 : vector<16x1xf32> to vector<16x128xf32>
    %56 = arith.addf %53, %55 : vector<16x128xf32>
    %cst_32 = arith.constant 0.000000e+00 : f32
    %57 = vector.broadcast %cst_32 : f32 to vector<16x128xf32>
    %58 = arith.maximumf %56, %57 : vector<16x128xf32>
    %c0_33 = arith.constant 0 : index
    %c0_34 = arith.constant 0 : index
    %59 = vector.load %arg4[%c0_33, %c0_34] : memref<45x16xbf16, #tpu.memory_space<vmem>>, vector<45x16xbf16>
    %60 = arith.truncf %58 : vector<16x128xf32> to vector<16x128xbf16>
    %cst_35 = arith.constant dense<0.000000e+00> : vector<45x128xf32>
    %61 = tpu.matmul %59, %60, %cst_35 {dimension_numbers = #tpu.dot_dimension_numbers<[1], [0], [0], [1], [0, 0, 1, 1], [], []>} : vector<45x16xbf16>, vector<16x128xbf16>, vector<45x128xf32> -> vector<45x128xf32>
    %c0_36 = arith.constant 0 : index
    %c0_37 = arith.constant 0 : index
    %62 = vector.load %arg5[%c0_36, %c0_37] : memref<45x1xf32, #tpu.memory_space<vmem>>, vector<45x1xf32>
    %63 = vector.broadcast %62 : vector<45x1xf32> to vector<45x128xf32>
    %64 = arith.addf %61, %63 : vector<45x128xf32>
    %65 = vector.extract_strided_slice %64 {offsets = [0, 0], sizes = [9, 128], strides = [1, 1]} : vector<45x128xf32> to vector<9x128xf32>
    %66 = arith.negf %65 : vector<9x128xf32>
    %67 = math.exp %66 : vector<9x128xf32>
    %cst_38 = arith.constant 1.000000e+00 : f32
    %68 = vector.broadcast %cst_38 : f32 to vector<9x128xf32>
    %69 = arith.addf %68, %67 : vector<9x128xf32>
    %70 = arith.divf %68, %69 : vector<9x128xf32>
    %c0_39 = arith.constant 0 : index
    %c0_40 = arith.constant 0 : index
    %71 = vector.load %arg7[%c0_39, %c0_40] : memref<9x128xf32, #tpu.memory_space<vmem>>, vector<9x128xf32>
    tpu.vector_store %arg7[%c0_39, %c0_40], %70 {strides = array<i32>} : memref<9x128xf32, #tpu.memory_space<vmem>>, vector<9x128xf32>,
    %72 = vector.extract_strided_slice %64 {offsets = [9, 0], sizes = [9, 128], strides = [1, 1]} : vector<45x128xf32> to vector<9x128xf32>
    %73 = vector.extract_strided_slice %64 {offsets = [18, 0], sizes = [9, 128], strides = [1, 1]} : vector<45x128xf32> to vector<9x128xf32>
    %74 = vector.extract_strided_slice %64 {offsets = [27, 0], sizes = [9, 128], strides = [1, 1]} : vector<45x128xf32> to vector<9x128xf32>
    %cst_41 = arith.constant 4.13516665 : f32
    %75 = vector.broadcast %cst_41 : f32 to vector<9x128xf32>
    %76 = arith.minimumf %74, %75 : vector<9x128xf32>
    %77 = vector.extract_strided_slice %64 {offsets = [36, 0], sizes = [9, 128], strides = [1, 1]} : vector<45x128xf32> to vector<9x128xf32>
    %cst_42 = arith.constant 4.13516665 : f32
    %78 = vector.broadcast %cst_42 : f32 to vector<9x128xf32>
    %79 = arith.minimumf %77, %78 : vector<9x128xf32>
    %c0_43 = arith.constant 0 : index
    %c0_44 = arith.constant 0 : index
    %80 = vector.load %arg6[%c0_43, %c0_44] : memref<36x128xf32, #tpu.memory_space<vmem>>, vector<9x128xf32>
    %c9 = arith.constant 9 : index
    %c0_45 = arith.constant 0 : index
    %81 = vector.load %arg6[%c9, %c0_45] : memref<36x128xf32, #tpu.memory_space<vmem>>, vector<9x128xf32>
    %c18_46 = arith.constant 18 : index
    %c0_47 = arith.constant 0 : index
    %82 = vector.load %arg6[%c18_46, %c0_47] : memref<36x128xf32, #tpu.memory_space<vmem>>, vector<9x128xf32>
    %c27 = arith.constant 27 : index
    %c0_48 = arith.constant 0 : index
    %83 = vector.load %arg6[%c27, %c0_48] : memref<36x128xf32, #tpu.memory_space<vmem>>, vector<9x128xf32>
    %84 = arith.subf %82, %80 : vector<9x128xf32>
    %85 = arith.subf %83, %81 : vector<9x128xf32>
    %cst_49 = arith.constant 5.000000e-01 : f32
    %86 = vector.broadcast %cst_49 : f32 to vector<9x128xf32>
    %87 = arith.mulf %86, %84 : vector<9x128xf32>
    %88 = arith.addf %80, %87 : vector<9x128xf32>
    %cst_50 = arith.constant 5.000000e-01 : f32
    %89 = vector.broadcast %cst_50 : f32 to vector<9x128xf32>
    %90 = arith.mulf %89, %85 : vector<9x128xf32>
    %91 = arith.addf %81, %90 : vector<9x128xf32>
    %92 = arith.mulf %72, %84 : vector<9x128xf32>
    %93 = arith.addf %92, %88 : vector<9x128xf32>
    %94 = arith.mulf %73, %85 : vector<9x128xf32>
    %95 = arith.addf %94, %91 : vector<9x128xf32>
    %96 = math.exp %76 : vector<9x128xf32>
    %97 = arith.mulf %96, %84 : vector<9x128xf32>
    %98 = math.exp %79 : vector<9x128xf32>
    %99 = arith.mulf %98, %85 : vector<9x128xf32>
    %cst_51 = arith.constant 5.000000e-01 : f32
    %100 = vector.broadcast %cst_51 : f32 to vector<9x128xf32>
    %101 = arith.mulf %100, %97 : vector<9x128xf32>
    %102 = arith.subf %93, %101 : vector<9x128xf32>
    %c0_52 = arith.constant 0 : index
    %c0_53 = arith.constant 0 : index
    %103 = vector.load %arg8[%c0_52, %c0_53] : memref<36x128xf32, #tpu.memory_space<vmem>>, vector<9x128xf32>
    tpu.vector_store %arg8[%c0_52, %c0_53], %102 {strides = array<i32>} : memref<36x128xf32, #tpu.memory_space<vmem>>, vector<9x128xf32>,
    %cst_54 = arith.constant 5.000000e-01 : f32
    %104 = vector.broadcast %cst_54 : f32 to vector<9x128xf32>
    %105 = arith.mulf %104, %99 : vector<9x128xf32>
    %106 = arith.subf %95, %105 : vector<9x128xf32>
    %c9_55 = arith.constant 9 : index
    %c0_56 = arith.constant 0 : index
    %107 = vector.load %arg8[%c9_55, %c0_56] : memref<36x128xf32, #tpu.memory_space<vmem>>, vector<9x128xf32>
    tpu.vector_store %arg8[%c9_55, %c0_56], %106 {strides = array<i32>} : memref<36x128xf32, #tpu.memory_space<vmem>>, vector<9x128xf32>,
    %cst_57 = arith.constant 5.000000e-01 : f32
    %108 = vector.broadcast %cst_57 : f32 to vector<9x128xf32>
    %109 = arith.mulf %108, %97 : vector<9x128xf32>
    %110 = arith.addf %93, %109 : vector<9x128xf32>
    %c18_58 = arith.constant 18 : index
    %c0_59 = arith.constant 0 : index
    %111 = vector.load %arg8[%c18_58, %c0_59] : memref<36x128xf32, #tpu.memory_space<vmem>>, vector<9x128xf32>
    tpu.vector_store %arg8[%c18_58, %c0_59], %110 {strides = array<i32>} : memref<36x128xf32, #tpu.memory_space<vmem>>, vector<9x128xf32>,
    %cst_60 = arith.constant 5.000000e-01 : f32
    %112 = vector.broadcast %cst_60 : f32 to vector<9x128xf32>
    %113 = arith.mulf %112, %99 : vector<9x128xf32>
    %114 = arith.addf %95, %113 : vector<9x128xf32>
    %c27_61 = arith.constant 27 : index
    %c0_62 = arith.constant 0 : index
    %115 = vector.load %arg8[%c27_61, %c0_62] : memref<36x128xf32, #tpu.memory_space<vmem>>, vector<9x128xf32>
    tpu.vector_store %arg8[%c27_61, %c0_62], %114 {strides = array<i32>} : memref<36x128xf32, #tpu.memory_space<vmem>>, vector<9x128xf32>,
    return
  }
  func.func @transform_0(%arg0: i32) -> (i32, i32, i32) {
    %c0_i32 = arith.constant 0 : i32
    %c0_i32_0 = arith.constant 0 : i32
    %c0_i32_1 = arith.constant 0 : i32
    return %arg0, %c0_i32, %c0_i32_0 : i32, i32, i32
  }
  func.func @transform_1(%arg0: i32) -> (i32, i32) {
    %c0_i32 = arith.constant 0 : i32
    %c0_i32_0 = arith.constant 0 : i32
    %c0_i32_1 = arith.constant 0 : i32
    return %c0_i32, %c0_i32_0 : i32, i32
  }
  func.func @transform_2(%arg0: i32) -> (i32, i32) {
    %c0_i32 = arith.constant 0 : i32
    %c0_i32_0 = arith.constant 0 : i32
    %c0_i32_1 = arith.constant 0 : i32
    return %c0_i32, %c0_i32_0 : i32, i32
  }
  func.func @transform_3(%arg0: i32) -> (i32, i32) {
    %c0_i32 = arith.constant 0 : i32
    %c0_i32_0 = arith.constant 0 : i32
    %c0_i32_1 = arith.constant 0 : i32
    return %c0_i32, %c0_i32_0 : i32, i32
  }
  func.func @transform_4(%arg0: i32) -> (i32, i32) {
    %c0_i32 = arith.constant 0 : i32
    %c0_i32_0 = arith.constant 0 : i32
    %c0_i32_1 = arith.constant 0 : i32
    return %c0_i32, %c0_i32_0 : i32, i32
  }
  func.func @transform_5(%arg0: i32) -> (i32, i32) {
    %c0_i32 = arith.constant 0 : i32
    %c0_i32_0 = arith.constant 0 : i32
    return %c0_i32, %arg0 : i32, i32
  }
  func.func @transform_6(%arg0: i32) -> (i32, i32) {
    %c0_i32 = arith.constant 0 : i32
    %c0_i32_0 = arith.constant 0 : i32
    return %c0_i32, %arg0 : i32, i32
  }
  func.func @transform_7(%arg0: i32) -> (i32, i32) {
    %c0_i32 = arith.constant 0 : i32
    %c0_i32_0 = arith.constant 0 : i32
    return %c0_i32, %arg0 : i32, i32
  }
}

</mosaic_0001>

<bundles_post_ra>
// kernel: neg.18
= control target key start
LH: loop header
LB: loop body
LE: loop exit
PB: predicated region body
PF: predicated region fallthrough
CT: control target
= control target key end

     0   :  { %s24_s0 = inlined_call_operand.vmem [shape: f32[9,1], index: 0, kind: input, shape index: {}]   ;;  %s25_s1 = inlined_call_operand.vmem [shape: f32[9,1], index: 1, kind: output, shape index: {}]  }
   0x1   :  { %v2_v0 = vld [vmem:[%s24_s0] sm:$0x1] }
   0x2   :  { %v5_v1 = vxor.u32 2147483648, %v2_v0 }
   0x4   :  { %7 = vst [vmem:[%s25_s1] sm:$0x1] %v5_v1 }

// kernel: _lambda_.1
= control target key start
LH: loop header
LB: loop body
LE: loop exit
PB: predicated region body
PF: predicated region fallthrough
CT: control target
= control target key end

     0   :  { %s2198_s0 = inlined_call_operand.hbm [shape: bf16[2,16,162], index: 0, kind: input, shape index: {}]   ;;  %s2199_s1 = inlined_call_operand.hbm [shape: bf16[16,144], index: 1, kind: input, shape index: {}]   ;;  %s2200_s2 = inlined_call_operand.hbm [shape: f32[16,1], index: 2, kind: input, shape index: {}]   ;;  %s2201_s3 = inlined_call_operand.hbm [shape: bf16[45,16], index: 3, kind: input, shape index: {}]   ;;  %s2202_s4 = inlined_call_operand.hbm [shape: f32[45,1], index: 4, kind: input, shape index: {}]   ;;  %s2203_s5 = inlined_call_operand.hbm [shape: f32[36,256], index: 5, kind: input, shape index: {}]   ;;  %s2204_s6 = inlined_call_operand.hbm [shape: f32[9,256], index: 6, kind: output, shape index: {0}]   ;;  %s2205_s7 = inlined_call_operand.hbm [shape: f32[36,256], index: 7, kind: output, shape index: {1}]  }
   0x1   :  { %2213 = sst [smem:[#allocation22_spill]] %s2198_s0 }
   0x2   :  { %2214 = sst [smem:[#allocation23_spill]] %s2199_s1 }
   0x3   :  { %2215 = sst [smem:[#allocation24_spill]] %s2200_s2 }
   0x4   :  { %2216 = sst [smem:[#allocation25_spill]] %s2201_s3 }
   0x5   :  { %13 = vsyncpa [#allocation3], 0 }
   0x6   :  { %15 = vsyncpa [#allocation3 + $0x1], 0 }
   0x7   :  { %16 = vsyncpa [#allocation6], 0 }
   0x8   :  { %17 = vsyncpa [#allocation9], 0 }
   0x9   :  { %18 = vsyncpa [#allocation12], 0 }
   0xa   :  { %20 = vsyncpa [#allocation12 + $0x1], 0 }
   0xb   :  { %21 = vsyncpa [#allocation4], 0 }
   0xc   :  { %23 = vsyncpa [#allocation4 + $0x1], 0 }
   0xd   :  { %24 = vsyncpa [#allocation15], 0 }
   0xe   :  { %26 = vsyncpa [#allocation15 + $0x1], 0  ;;  %s1678_s24 = smov 0   ;;  %s1680_s25 = smov 0  }
   0xf   :  { %s1682_s26 = smov 0   ;;  %s1684_s27 = smov 0  }
  0x10 LB: > { %s1699_s28 = sadd.s32 4294967295, %s1604_s27   ;;  %s1109_s29 = sadd.s32 4294967294, %s1604_s27   ;;  %s1604_s27 = sphi %s1684_s27, %s2245_s27   ;;  %s1600_s26 = sphi %s1682_s26, %s2244_s26   ;;  %s1596_s25 = sphi %s1680_s25, %s2243_s25   ;;  %s1592_s24 = sphi %s1678_s24, %s2242_s24  }
  0x11   : > { %p52_p0 = scmp.ne.s32.totalorder %s1596_s25, %s1592_s24  ;;  %p2206_p1 = scmp.eq.s32.totalorder %s1699_s28, 0 }
  0x12   : > { %p192_p3 = scmp.eq.s32.totalorder %s1109_s29, 1  ;;  %p1110_p5 = scmp.ge.s32.totalorder %s1604_s27, 1 }
  0x13   : > { %p1708_p4 = por %p2206_p1, %p52_p0  ;;  %p225_p7 = scmp.lt.s32.totalorder %s1604_s27, 3 }
  0x14   : > { %p1713_p6 = por %p192_p3, %p52_p0  ;;  %s1606_s10 = smov [#allocation5]  }
  0x15   : > { %s2217_s30 = scalar_select %p1708_p4, 1, 0 }
  0x16   : > { %s2218_s8 = scalar_select %p1713_p6, 1, 0 }
  0x17   : > { %p1718_p8 = pnand %p1110_p5, %p225_p7  ;;  %s237_s11 = sshll.u32 %s1606_s10, 4  ;;  %s1722_s11 = int_to_ptr.vmem [resolvable:$true] %s237_s11 }
  0x18   : > { %s1607_s13 = smov [#allocation8]   ;;  %s2221_s1 = sld [smem:[#allocation23_spill]] }
  0x19   : > { %s2219_s9 = scalar_select %p1718_p8, 1, 0 }
  0x1a   : > { %p1201_p9 = pneg %p1718_p8  ;;  %s263_s14 = sshll.u32 %s1607_s13, 4  ;;  %s1733_s14 = int_to_ptr.vmem [resolvable:$true] %s263_s14 }
  0x1c   : > { %p1729_p11 = pnand %p1201_p9, %p2206_p1 }
  0x1e   : > { %s1322_s17 = scalar_lea.hbm %s2221_s1, 256  ;;  %p1743_p13 = pneg %p1729_p11 }
  0x1f   : > { %p1323_p12 = scmp.ne.s32.totalorder %s2221_s1, %s1322_s17  ;;  %p1329_p5 = scmp.lt.u32.totalorder %s1322_s17, %s2221_s1 }
  0x21   : > { %p1325_p0 = pnand %p1743_p13, %p1323_p12 }
  0x23   : > { %p1326_p3 = pneg %p1325_p0 }
  0x25   : > { %p1331_p7 = pnand %p1329_p5, %p1326_p3 }
  0x27   : > { %1334 = shalt.err (!%p1331_p7)
}
  0x28   : > { %s1335_s23 = scalar_lea.vmem %s1722_s11, 256  ;;  %p1343_p2 = scmp.lt.s32.totalorder %s1722_s11, %s1722_s11 }
  0x29   : > { %p1336_p9 = scmp.ne.s32.totalorder %s1722_s11, %s1335_s23  ;;  %p1344_p6 = scmp.lt.s32.totalorder %s1335_s23, %s1335_s23 }
  0x2b   : > { %p1338_p10 = pnand %p1336_p9, %p1743_p13  ;;  %p1345_p12 = por %p1344_p6, %p1343_p2 }
  0x2d   : > { %p1339_p1 = pneg %p1338_p10 }
  0x2f   : > { %p1346_p0 = pnand %p1345_p12, %p1339_p1 }
  0x31   : > { %1349 = shalt.err (!%p1346_p0)
}
  0x32   : > { %s2207_s29 = smov 128   ;;  %s2209_s10 = smov 8  }
  0x33   : > { %1204 = dma.hbm_to_vmem [thread:$0]  (!%p1729_p11), %s2221_s1, 256, %s1722_s11, [#allocation6], %s2207_s29, %s2207_s29, %s2209_s10  }
  0x34   : > { %s2223_s3 = sld [smem:[#allocation25_spill]] }
  0x3a   : > { %s1350_s18 = scalar_lea.hbm %s2223_s3, 384 }
  0x3b   : > { %p1351_p1 = scmp.ne.s32.totalorder %s2223_s3, %s1350_s18  ;;  %p1357_p10 = scmp.lt.u32.totalorder %s1350_s18, %s2223_s3 }
  0x3d   : > { %p1353_p2 = pnand %p1351_p1, %p1743_p13 }
  0x3f   : > { %p1354_p6 = pneg %p1353_p2 }
  0x41   : > { %p1359_p3 = pnand %p1357_p10, %p1354_p6 }
  0x43   : > { %1362 = shalt.err (!%p1359_p3)
}
  0x44   : > { %s1363_s11 = scalar_lea.vmem %s1733_s14, 384  ;;  %p1371_p12 = scmp.lt.s32.totalorder %s1733_s14, %s1733_s14 }
  0x45   : > { %p1364_p5 = scmp.ne.s32.totalorder %s1733_s14, %s1363_s11  ;;  %p1372_p0 = scmp.lt.s32.totalorder %s1363_s11, %s1363_s11 }
  0x47   : > { %p1366_p7 = pnand %p1364_p5, %p1743_p13  ;;  %p1373_p1 = por %p1372_p0, %p1371_p12 }
  0x49   : > { %p1367_p9 = pneg %p1366_p7 }
  0x4b   : > { %p1374_p2 = pnand %p1373_p1, %p1367_p9 }
  0x4d   : > { %1377 = shalt.err (!%p1374_p2)
}
  0x4e   : > { %s1610_s13 = smov 64   ;;  %s1611_s15 = smov 4  }
  0x4f   : > { %1210 = dma.hbm_to_vmem [thread:$0]  (!%p1729_p11), %s2223_s3, 384, %s1733_s14, [#allocation9], %s1610_s13, %s1610_s13, %s1611_s15  }
  0x50   : > { %s1612_s18 = smov [#allocation7]   ;;  %s1613_s21 = smov [#allocation10]  }
  0x51   : > { %s250_s19 = sshll.u32 %s1612_s18, 4  ;;  %s276_s22 = sshll.u32 %s1613_s21, 4  ;;  %s251_s19 = int_to_ptr.vmem [resolvable:$true] %s250_s19  ;;  %s1790_s22 = int_to_ptr.vmem [resolvable:$true] %s276_s22 }
  0x52   : > { %s2224_s2 = sld [smem:[#allocation24_spill]] }
  0x58   : > { %s1378_s29 = scalar_lea.hbm %s2224_s2, 256 }
  0x59   : > { %p1379_p6 = scmp.ne.s32.totalorder %s2224_s2, %s1378_s29  ;;  %p1385_p5 = scmp.lt.u32.totalorder %s1378_s29, %s2224_s2 }
  0x5b   : > { %p1381_p10 = pnand %p1379_p6, %p1743_p13 }
  0x5d   : > { %p1382_p3 = pneg %p1381_p10 }
  0x5f   : > { %p1387_p7 = pnand %p1385_p5, %p1382_p3 }
  0x61   : > { %1390 = shalt.err (!%p1387_p7)
}
  0x62   : > { %s1391_s13 = scalar_lea.vmem %s251_s19, 256  ;;  %p1399_p1 = scmp.lt.s32.totalorder %s251_s19, %s251_s19 }
  0x63   : > { %p1392_p9 = scmp.ne.s32.totalorder %s251_s19, %s1391_s13  ;;  %p1400_p2 = scmp.lt.s32.totalorder %s1391_s13, %s1391_s13 }
  0x65   : > { %p1394_p12 = pnand %p1392_p9, %p1743_p13  ;;  %p1401_p4 = por %p1400_p2, %p1399_p1 }
  0x67   : > { %p1395_p0 = pneg %p1394_p12 }
  0x69   : > { %p1402_p8 = pnand %p1401_p4, %p1395_p0 }
  0x6b   : > { %1405 = shalt.err (!%p1402_p8)
}
  0x6c   : > { %s2225_s1 = smov 8   ;;  %s2226_s10 = smov 128  }
  0x6d   : > { %1207 = dma.hbm_to_vmem [thread:$0]  (!%p1729_p11), %s2224_s2, 256, %s251_s19, [#allocation6], %s2226_s10, %s2226_s10, %s2225_s1  }
  0x6e   : > { %s1406_s21 = scalar_lea.hbm %s2202_s4, 768 }
  0x6f   : > { %p1407_p6 = scmp.ne.s32.totalorder %s2202_s4, %s1406_s21  ;;  %p1413_p10 = scmp.lt.u32.totalorder %s1406_s21, %s2202_s4 }
  0x71   : > { %p1409_p4 = pnand %p1407_p6, %p1743_p13 }
  0x73   : > { %p1410_p8 = pneg %p1409_p4 }
  0x75   : > { %p1415_p3 = pnand %p1413_p10, %p1410_p8 }
  0x77   : > { %1418 = shalt.err (!%p1415_p3)
}
  0x78   : > { %s1419_s19 = scalar_lea.vmem %s1790_s22, 768  ;;  %p1427_p12 = scmp.lt.s32.totalorder %s1790_s22, %s1790_s22 }
  0x79   : > { %p1420_p5 = scmp.ne.s32.totalorder %s1790_s22, %s1419_s19  ;;  %p1428_p0 = scmp.lt.s32.totalorder %s1419_s19, %s1419_s19 }
  0x7b   : > { %p1422_p7 = pnand %p1420_p5, %p1743_p13  ;;  %p1429_p1 = por %p1428_p0, %p1427_p12 }
  0x7d   : > { %p1423_p9 = pneg %p1422_p7 }
  0x7f   : > { %p1430_p2 = pnand %p1429_p1, %p1423_p9 }
  0x81   : > { %1433 = shalt.err (!%p1430_p2)
}
  0x82   : > { %1213 = dma.hbm_to_vmem [thread:$0]  (!%p1729_p11), %s2202_s4, 768, %s1790_s22, [#allocation9], %s2226_s10, %s2226_s10, %s2225_s1  }
  0x83   : > { %s1840_s12 = sadd.s32 1, %s1604_s27   ;;  %s39_s29 = sadd.s32 1, %s1600_s26 }
  0x84   : > { %s36_s20 = ssub.s32 %s1604_s27, %s1840_s12  ;;  %p46_p6 = scmp.ne.s32.totalorder %s1600_s26, %s1596_s25 }
  0x85   : > { %p37_p13 = scmp.eq.s32.totalorder %s36_s20, 0  ;;  %p47_p4 = scmp.eq.s32.totalorder %s1604_s27, 0 }
  0x86   : > { %p2227_p10 = scmp.eq.s32.totalorder %s1699_s28, 1  ;;  %p1232_p5 = scmp.lt.s32.totalorder %s1604_s27, 2 }
  0x87   : > { %s1849_s17 = scalar_select %p37_p13, %s1600_s26, %s39_s29  }
  0x88   : > { %p48_p8 = por %p47_p4, %p46_p6  ;;  %p1853_p3 = por %p2227_p10, %p46_p6 }
  0x89   : > { %s1859_s21 = sand.u32 1, %s1600_s26   ;;  %s1156_s23 = sshll.u32 %s1604_s27, 8 }
  0x8a   : > { %s1116_s22 = sshll.u32 %s1859_s21, 4  ;;  %s2229_s0 = sld [smem:[#allocation22_spill]] }
  0x8b   : > { %s294_s19 = scalar_lea.vmem [#allocation2], %s1116_s22  ;;  %p1870_p11 = pnand %p1232_p5, %p48_p8 }
  0x8c   : > { %s301_s13 = sshll.u32 %s294_s19, 4  ;;  %s1119_s29 = sshll.u32 %s1604_s27, 7  ;;  %s1868_s13 = int_to_ptr.vmem [resolvable:$true] %s301_s13 }
  0x8d   : > { %s291_s2 = scalar_lea.sflag [#allocation3], %s1859_s21  ;;  %p1436_p9 = pneg %p1870_p11 }
  0x90   : > { %s1866_s14 = scalar_lea.hbm %s2229_s0, %s1156_s23  ;;  %s1439_s16 = scalar_lea.hbm %s2229_s0, 512 }
  0x91   : > { %s1434_s11 = scalar_lea.hbm %s1866_s14, 256  ;;  %p1440_p1 = scmp.lt.u32.totalorder %s1866_s14, %s2229_s0 }
  0x92   : > { %p1435_p7 = scmp.ne.s32.totalorder %s1866_s14, %s1434_s11  ;;  %p1441_p2 = scmp.lt.u32.totalorder %s1439_s16, %s1434_s11 }
  0x93   : > { %p1443_p6 = scmp.lt.u32.totalorder %s1434_s11, %s1866_s14 }
  0x94   : > { %p1437_p12 = pnand %p1436_p9, %p1435_p7  ;;  %p1442_p13 = por %p1441_p2, %p1440_p1 }
  0x96   : > { %p1438_p0 = pneg %p1437_p12  ;;  %p1444_p4 = por %p1443_p6, %p1442_p13 }
  0x98   : > { %p1445_p8 = pnand %p1444_p4, %p1438_p0 }
  0x9a   : > { %1448 = shalt.err (!%p1445_p8)
}
  0x9b   : > { %s1449_s20 = scalar_lea.vmem %s1868_s13, 256  ;;  %s1614_s22 = smov [#allocation2]  }
  0x9c   : > { %p1450_p10 = scmp.ne.s32.totalorder %s1868_s13, %s1449_s20  ;;  %s1454_s23 = sshll.u32 %s1614_s22, 4  ;;  %s1455_s23 = int_to_ptr.vmem [resolvable:$false] %s1454_s23 }
  0x9d   : > { %s1456_s3 = scalar_lea.vmem %s1455_s23, 512  ;;  %p1457_p12 = scmp.lt.s32.totalorder %s1868_s13, %s1455_s23 }
  0x9e   : > { %p1452_p5 = pnand %p1450_p10, %p1436_p9  ;;  %p1458_p1 = scmp.lt.s32.totalorder %s1456_s3, %s1449_s20 }
  0xa0   : > { %p1453_p7 = pneg %p1452_p5  ;;  %p1459_p2 = por %p1458_p1, %p1457_p12 }
  0xa2   : > { %p1460_p13 = pnand %p1459_p2, %p1453_p7 }
  0xa4   : > { %1463 = shalt.err (!%p1460_p13)
}
  0xa5   : > { %1217 = dma.hbm_to_vmem [thread:$0]  (!%p1870_p11), %s1866_s14, 256, %s1868_s13, %s291_s2, %s2226_s10, %s2226_s10, %s2225_s1  }
  0xa6   : > { %s1912_s16 = scalar_lea.hbm %s2203_s5, %s1119_s29  ;;  %s2231_s19 = smul.u32 40, %s1859_s21 }
  0xa7   : > { %s312_s3 = scalar_lea.sflag [#allocation12], %s1859_s21  ;;  %s1464_s0 = scalar_lea.hbm %s1912_s16, 640 }
  0xa8   : > { %s315_s22 = scalar_lea.vmem [#allocation11], %s2231_s19  ;;  %p1465_p0 = scmp.ne.s32.totalorder %s1912_s16, %s1464_s0 }
  0xa9   : > { %s321_s23 = sshll.u32 %s315_s22, 4  ;;  %s1469_s13 = scalar_lea.hbm %s2203_s5, 1280  ;;  %s1916_s23 = int_to_ptr.vmem [resolvable:$true] %s321_s23 }
  0xaa   : > { %p1467_p6 = pnand %p1465_p0, %p1436_p9  ;;  %p1470_p8 = scmp.lt.u32.totalorder %s1912_s16, %s2203_s5 }
  0xab   : > { %p1471_p10 = scmp.lt.u32.totalorder %s1469_s13, %s1464_s0  ;;  %p1473_p7 = scmp.lt.u32.totalorder %s1464_s0, %s1912_s16 }
  0xac   : > { %p1468_p4 = pneg %p1467_p6 }
  0xad   : > { %p1472_p5 = por %p1471_p10, %p1470_p8 }
  0xaf   : > { %p1474_p12 = por %p1473_p7, %p1472_p5 }
  0xb1   : > { %p1475_p1 = pnand %p1474_p12, %p1468_p4 }
  0xb3   : > { %1478 = shalt.err (!%p1475_p1)
}
  0xb4   : > { %s1479_s20 = scalar_lea.vmem %s1916_s23, 640  ;;  %s1615_s19 = smov [#allocation11]  }
  0xb5   : > { %p1480_p2 = scmp.ne.s32.totalorder %s1916_s23, %s1479_s20  ;;  %s1484_s22 = sshll.u32 %s1615_s19, 4  ;;  %s1485_s22 = int_to_ptr.vmem [resolvable:$false] %s1484_s22 }
  0xb6   : > { %s1486_s2 = scalar_lea.vmem %s1485_s22, 1280  ;;  %p1487_p6 = scmp.lt.s32.totalorder %s1916_s23, %s1485_s22 }
  0xb7   : > { %p1482_p13 = pnand %p1480_p2, %p1436_p9  ;;  %p1488_p8 = scmp.lt.s32.totalorder %s1486_s2, %s1479_s20 }
  0xb9   : > { %p1483_p0 = pneg %p1482_p13  ;;  %p1489_p10 = por %p1488_p8, %p1487_p6 }
  0xbb   : > { %p1490_p5 = pnand %p1489_p10, %p1483_p0 }
  0xbd   : > { %1493 = shalt.err (!%p1490_p5)
}
  0xbe   : > { %s1616_s0 = smov 256   ;;  %p2232_p9 = scmp.ne.s32.totalorder %s2219_s9, 0 }
  0xbf   : > { %1220 = dma.hbm_to_vmem [thread:$0]  (!%p1870_p11), %s1912_s16, 640, %s1916_s23, %s312_s3, %s1616_s0, %s2226_s10, %s2225_s1  }
  0xc0   : > { %333 = sbr.rel (%p2232_p9) target bundleno = 988 (0x3dc), region = 44  ;;  %s1949_s14 = sand.u32 (!%p2232_p9), 1, %s1596_s25  }
  0xc1   : > { %s1121_s13 = sshll.u32 (!%p2232_p9), %s1949_s14, 4  ;;  %s336_s29 = scalar_lea.sflag (!%p2232_p9), [#allocation3], %s1949_s14 }
  0xc2   : > { %s1955_s15 = scalar_lea.vmem (!%p2232_p9), [#allocation2], %s1121_s13  ;;  %p2233_p4 = scmp.ne.s32.totalorder (!%p2232_p9), %s2217_s30, 0 }
  0xc7   : > { %1567 = dma.done.wait (%p2233_p4), %s336_s29, 256  }
  0xc8   : > { %1569 = vsyncadd (%p2233_p4), %s336_s29, 4294967040  ;;  %p2234_p11 = scmp.eq.s32.totalorder %s1699_s28, 0 }
  0xca   : > { %1571 = dma.done.wait (%p2234_p11), [#allocation6], 512   ;;  %p2235_p7 = pmov %p2234_p11 }
  0xcc   : > { %1573 = vsyncadd (%p2235_p7), [#allocation6], 4294966784  ;;  %p2236_p12 = pmov %p2235_p7 }
  0xcd   : > { %p2237_p1 = pmov %p2235_p7 }
  0xce   : > { %1575 = dma.done.wait (%p2236_p12), [#allocation9], 1152  }
  0xcf   : > { %1577 = vsyncadd (%p2237_p1), [#allocation9], 4294966144  ;;  %s1176_s9 = smul.u32 40, %s1949_s14  ;;  %s361_s1 = scalar_lea.sflag [#allocation12], %s1949_s14  ;;  %v408_v0 = vlaneseq }
  0xd1   : > { %s1973_s10 = scalar_lea.vmem [#allocation11], %s1176_s9 }
  0xd2   : > { %1579 = dma.done.wait (%p2233_p4), %s361_s1, 640  }
  0xd3   : > { %1581 = vsyncadd (%p2233_p4), %s361_s1, 4294966656  ;;  %v1617_v1 = vmov 0   ;;  %v409_v2 = vand.u32 127, %v408_v0  ;;  %v1988_v6 = vld [vmem:[%s1955_s15] sm:$0xff]  ;;  %s1618_s30 = smov 2   ;;  %s1619_s21 = smov 18  }
  0xd4   : > { %611 = vmatprep.subr.bf16.mxu0 %v1617_v1  ;;  %1298 = vset.pattern.permute.xlu1 %v1617_v1  ;;  %v1994_v8 = vld [vmem:[%s1955_s15 + $0x8] sm:$0xff]  ;;  %s1620_s16 = smov 16   ;;  %s1621_s23 = smov 32   ;;  %v424_v11 = vld [vmem:[%s1955_s15] sm:$0xf]  ;;  %vm436_vm4 = vcmask 15360  }
  0xd5   : > { %1299 = vset.pattern.permute.xlu0 %v1617_v1  ;;  %v414_v3 = vand.u32 15, %v409_v2  ;;  %v1998_v9 = vcombine.low %v1988_v6, %v1994_v8  ;;  %s1622_s3 = smov 34   ;;  %v2002_v10 = vcombine.high %v1988_v6, %v1994_v8  ;;  %s1623_s11 = smov 127   ;;  %v425_v12 = vld [vmem:[%s1955_s15 + $0x8] sm:$0xf]  ;;  %vm445_vm6 = vcmask 130048  }
  0xd6   : > { %vm453_vm7 = vcmask 146432   ;;  %s1624_s20 = smov 126   ;;  %vm461_vm9 = vcmask 261120   ;;  %vm492_vm10 = vcmask 1039360   ;;  %s1625_s19 = smov 112   ;;  %vm469_vm13 = vcmask 277504  }
  0xd7   : > { %vm423_vm0 = vcmp.lt.s32.totalorder %v414_v3, 15  ;;  %vm422_vm1 = vcmp.gt.s32.totalorder %v414_v3, 0  ;;  %s1626_s22 = smov 111   ;;  %s1627_s2 = smov 110   ;;  %v1304_v47 = vld [vmem:[#allocation5 + $0x4] ss:$8 sps:$4 sm:$0xff]  }
  0xd8   : > { %vm431_vm2 = vmpackc.low %vm423_vm0, %vm423_vm0  ;;  %1142 = vmatprep.mubr.msk.bf16.mxu0 %vm445_vm6, %v1304_v47  ;;  %s1628_s0 = smov 96   ;;  %s1629_s29 = smov 95   ;;  %v586_v55 = vld [vmem:[#allocation7] sm:$0xff]  ;;  %v587_v56 = vld [vmem:[#allocation7 + $0x8] sm:$0xff]  ;;  %vm507_vm15 = vcmask 1031168   ;;  %vm522_vm0 = vcmask 916480  }
  0xd9   : > { %v432_v4 = vsel %vm431_vm2, 65537, %v1617_v1  ;;  %vm1983_vm3 = vmpackc.low %vm422_vm1, %vm422_vm1  ;;  %s1630_s15 = smov 94   ;;  %v661_v57 = vld [vmem:[#allocation10] sm:$0xff]  ;;  %v664_v58 = vld [vmem:[#allocation10 + $0x18] sm:$0xff]  ;;  %vm529_vm1 = vcmask 908288   ;;  %vm544_vm2 = vcmask 900096  }
  0xda   : > { %433 = vrot.lane.b32.xlu0 %v432_v4, %s1618_s30  ;;  %v441_v7 = vsel %vm1983_vm3, 65537, %v1617_v1  ;;  %450 = vrot.lane.b32.xlu1 %v432_v4, %s1619_s21  ;;  %v427_v13 = vsel %vm1983_vm3, %v424_v11, 0  ;;  %v428_v14 = vsel %vm1983_vm3, %v425_v12, 0  ;;  %v662_v59 = vld [vmem:[#allocation10 + $0x8] sm:$0xff]  ;;  %v665_v61 = vld [vmem:[#allocation10 + $0x20] sm:$0xff]  ;;  %v663_v62 = vld [vmem:[#allocation10 + $0x10] sm:$0xff] }
  0xdb   : > { %v1127_v15 = vcombine.low %v427_v13, %v428_v14  ;;  %v666_v60 = vld [vmem:[#allocation10 + $0x28] sm:$0x1f]  ;;  %vm559_vm3 = vcmask 785408   ;;  %s1152_s1 = sshll.u32 %s1699_s28, 7 }
  0xdd   : > { %612 = vmatpush1.bf16.msra.mxu0 %v1127_v15 }
  0xde   : > { %442 = vrot.lane.b32.xlu0 %v441_v7, %s1620_s16  ;;  %458 = vrot.lane.b32.xlu1 %v441_v7, %s1621_s23  ;;  %s2082_s23 = scalar_lea.hbm %s2204_s6, %s1152_s1 }
  0xdf   : > { %613 = vmatprep.subr.bf16.mxu0 %v1617_v1 }
  0xe2   : > { %466 = vrot.lane.b32.xlu0 %v432_v4, %s1622_s3  ;;  %488 = vrot.lane.b32.xlu1 %v1998_v9, %s1623_s11 }
  0xe6   : > { %490 = vrot.lane.b32.xlu0 %v2002_v10, %s1623_s11  ;;  %s1633_s11 = smov [#allocation13]  }
 0x14c   : > { %v434_v16 = vpop.permute.xlu0 %433  ;;  %v451_v17 = vpop.permute.xlu1 %450 }
 0x14d   : > { %v435_v18 = vrot.slane %v434_v16, 4  ;;  %v452_v24 = vrot.slane %v451_v17, 4 }
 0x14f   : > { %v437_v19 = vsel %vm436_vm4, %v435_v18, %v434_v16  ;;  %v454_v32 = vsel %vm453_vm7, %v452_v24, %v451_v17  ;;  %vm566_vm4 = vcmask 777216   ;;  %vm1632_vm7 = vmmov 0  }
 0x150   : > { %vm438_vm5 = vcmp.ne.s16.totalorder %v437_v19, 0  ;;  %v443_v20 = vpop.permute.xlu0 %442  ;;  %v459_v27 = vpop.permute.xlu1 %458  ;;  %vm455_vm11 = vcmp.ne.s16.totalorder %v454_v32, 0 }
 0x151   : > { %v439_v21 = vsel %vm438_vm5, %v1988_v6, 0  ;;  %v440_v22 = vsel %vm438_vm5, %v1994_v8, 0  ;;  %v444_v23 = vrot.slane %v443_v20, 4  ;;  %v460_v33 = vrot.slane %v459_v27, 4 }
 0x152   : > { %v1131_v25 = vcombine.high %v439_v21, %v440_v22  ;;  %v1130_v26 = vcombine.low %v439_v21, %v440_v22  ;;  %v456_v40 = vsel %vm455_vm11, %v1988_v6, 0  ;;  %v457_v41 = vsel %vm455_vm11, %v1994_v8, 0  ;;  %v1302_v21 = vld [vmem:[#allocation5] ss:$8 sps:$4 sm:$0xff]  }
 0x153   : > { %v446_v28 = vsel %vm445_vm6, %v444_v23, %v443_v20  ;;  %v462_v38 = vsel %vm461_vm9, %v460_v33, %v459_v27  ;;  %v1135_v43 = vcombine.high %v456_v40, %v457_v41  ;;  %v1134_v44 = vcombine.low %v456_v40, %v457_v41  ;;  %v1305_v33 = vld [vmem:[#allocation8] sm:$0xff]  }
 0x154   : > { %vm447_vm8 = vcmp.ne.s16.totalorder %v446_v28, 0  ;;  %505 = vrot.lane.b32.xlu0 %v1131_v25, %s1624_s20  ;;  %503 = vrot.lane.b32.xlu1 %v1130_v26, %s1624_s20  ;;  %v467_v29 = vpop.permute.xlu0 %466  ;;  %v489_v36 = vpop.permute.xlu1 %488  ;;  %vm463_vm12 = vcmp.ne.s16.totalorder %v462_v38, 0  ;;  %vm581_vm5 = vcmask 769024   ;;  %v1631_v22 = vmov 0.0   ;;  %s1498_s20 = sshll.u32 %s1633_s11, 4  ;;  %s1499_s20 = int_to_ptr.vmem [resolvable:$false] %s1498_s20 }
 0x155   : > { %v448_v30 = vsel %vm447_vm8, %v1988_v6, 0  ;;  %v449_v31 = vsel %vm447_vm8, %v1994_v8, 0  ;;  %v468_v42 = vrot.slane %v467_v29, 4  ;;  %v464_v45 = vsel %vm463_vm12, %v1988_v6, 0  ;;  %1161 = vmatprep.subr.bf16.mxu1 %v1631_v22  ;;  %1163 = vmatprep.mubr.msk.bf16.mxu1 %vm1632_vm7, %v1631_v22 }
 0x156   : > { %v1133_v34 = vcombine.high %v448_v30, %v449_v31  ;;  %v1132_v35 = vcombine.low %v448_v30, %v449_v31  ;;  %v465_v46 = vsel %vm463_vm12, %v1994_v8, 0  ;;  %vm857_vm8 = vcmask 1042432  }
 0x157   : > { %v470_v48 = vsel %vm469_vm13, %v468_v42, %v467_v29  ;;  %v1137_v49 = vcombine.high %v464_v45, %v465_v46  ;;  %v1136_v50 = vcombine.low %v464_v45, %v465_v46  ;;  %vm836_vm9 = vcmask 1041408  }
 0x158   : > { %520 = vrot.lane.b32.xlu0 %v1133_v34, %s1625_s19  ;;  %518 = vrot.lane.b32.xlu1 %v1132_v35, %s1625_s19  ;;  %v491_v37 = vpop.permute.xlu0 %490  ;;  %vm471_vm14 = vcmp.ne.s16.totalorder %v470_v48, 0  ;;  %v1306_v34 = vld [vmem:[#allocation8 + $0x8] sm:$0xff]   ;;  %v1307_v35 = vld [vmem:[#allocation8 + $0x10] sm:$0x7f]   ;;  %s1500_s19 = scalar_lea.vmem %s1499_s20, 512 }
 0x159   : > { %v493_v39 = vsel %vm492_vm10, %v489_v36, %v491_v37  ;;  %v472_v51 = vsel %vm471_vm14, %v1988_v6, 0  ;;  %v473_v52 = vsel %vm471_vm14, %v1994_v8, 0  ;;  %vm867_vm10 = vcmask 1043456  }
 0x15a   : > { %614 = vmatpush1.bf16.msra.mxu0 %v493_v39  ;;  %v1139_v53 = vcombine.high %v472_v51, %v473_v52  ;;  %v1138_v54 = vcombine.low %v472_v51, %v473_v52 }
 0x15b   : > { %615 = vmatprep.subr.bf16.mxu0 %v1617_v1 }
 0x15c   : > { %527 = vrot.lane.b32.xlu0 %v2002_v10, %s1626_s22  ;;  %525 = vrot.lane.b32.xlu1 %v1998_v9, %s1626_s22 }
 0x160   : > { %542 = vrot.lane.b32.xlu0 %v1135_v43, %s1627_s2  ;;  %540 = vrot.lane.b32.xlu1 %v1134_v44, %s1627_s2 }
 0x164   : > { %557 = vrot.lane.b32.xlu0 %v1137_v49, %s1628_s0  ;;  %555 = vrot.lane.b32.xlu1 %v1136_v50, %s1628_s0 }
 0x168   : > { %564 = vrot.lane.b32.xlu0 %v2002_v10, %s1629_s29  ;;  %562 = vrot.lane.b32.xlu1 %v1998_v9, %s1629_s29 }
 0x16c   : > { %579 = vrot.lane.b32.xlu0 %v1139_v53, %s1630_s15  ;;  %577 = vrot.lane.b32.xlu1 %v1138_v54, %s1630_s15  ;;  %v795_v53 = vld [vmem:[%s1973_s10] sm:$0xff]  ;;  %v799_v54 = vld [vmem:[%s1973_s10 + $0x12] sm:$0xff] }
 0x170   : > { %590 = vperm.xlu1 %1298, %v586_v55   ;;  %595 = vperm.xlu0 %1299, %v587_v56   ;;  %v796_v56 = vld [vmem:[%s1973_s10 + $0x8] sm:$0x1] }
 0x174   : > { %669 = vperm.xlu1 %1298, %v661_v57   ;;  %684 = vperm.xlu0 %1299, %v664_v58   ;;  %v800_v57 = vld [vmem:[%s1973_s10 + $0x1a] sm:$0x1] }
 0x178   : > { %674 = vperm.xlu1 %1298, %v662_v59   ;;  %694 = vperm.xlu0 %1299, %v666_v60  }
 0x17c   : > { %689 = vperm.xlu1 %1298, %v665_v61   ;;  %v797_v61 = vld [vmem:[%s1973_s10 + $0x9] sm:$0xff] }
 0x180   : > { %679 = vperm.xlu1 %1298, %v663_v62   ;;  %v801_v62 = vld [vmem:[%s1973_s10 + $0x1b] sm:$0xff] }
 0x1c6   : > { %v506_v63 = vpop.permute.xlu0 %505  ;;  %v504_v0 = vpop.permute.xlu1 %503 }
 0x1c7   : > { %v508_v2 = vsel %vm507_vm15, %v504_v0, %v506_v63 }
 0x1c8   : > { %616 = vmatpush1.bf16.msra.mxu0 %v508_v2  ;;  %v798_v2 = vld [vmem:[%s1973_s10 + $0x11] sm:$0x1] }
 0x1c9   : > { %617 = vmatprep.subr.bf16.mxu0 %v1617_v1 }
 0x1ca   : > { %v521_v3 = vpop.permute.xlu0 %520  ;;  %v519_v4 = vpop.permute.xlu1 %518 }
 0x1cb   : > { %v523_v5 = vsel %vm522_vm0, %v519_v4, %v521_v3  ;;  %v802_v3 = vld [vmem:[%s1973_s10 + $0x23] sm:$0x1]  ;;  %s397_s10 = scalar_lea.vmem [#allocation13], %s1121_s13  ;;  %s911_s13 = scalar_lea.sflag [#allocation4], %s1949_s14 }
 0x1cc   : > { %618 = vmatpush1.bf16.msra.mxu0 %v523_v5  ;;  %s928_s30 = sshll.u32 %s397_s10, 4  ;;  %s2088_s30 = int_to_ptr.vmem [resolvable:$true] %s928_s30 }
 0x1cd   : > { %619 = vmatprep.subr.bf16.mxu0 %v1617_v1  ;;  %s1494_s3 = scalar_lea.vmem %s2088_s30, 256  ;;  %p1501_p6 = scmp.lt.s32.totalorder %s2088_s30, %s1499_s20 }
 0x1ce   : > { %v528_v6 = vpop.permute.xlu0 %527  ;;  %v526_v7 = vpop.permute.xlu1 %525  ;;  %p1495_p2 = scmp.ne.s32.totalorder %s2088_s30, %s1494_s3  ;;  %p1502_p8 = scmp.lt.s32.totalorder %s1500_s19, %s1494_s3 }
 0x1cf   : > { %v530_v8 = vsel %vm529_vm1, %v526_v7, %v528_v6 }
 0x1d0   : > { %620 = vmatpush1.bf16.msra.mxu0 %v530_v8  ;;  %v2058_v8 = vsub.f32 %v799_v54, %v795_v53  ;;  %p1496_p13 = pnand %p1495_p2, %p1853_p3  ;;  %p1503_p10 = por %p1502_p8, %p1501_p6 }
 0x1d1   : > { %621 = vmatprep.subr.bf16.mxu0 %v1617_v1 }
 0x1d2   : > { %v543_v9 = vpop.permute.xlu0 %542  ;;  %v541_v10 = vpop.permute.xlu1 %540  ;;  %p1497_p0 = pneg %p1496_p13 }
 0x1d3   : > { %v545_v11 = vsel %vm544_vm2, %v541_v10, %v543_v9  ;;  %v804_v9 = vsub.f32 %v800_v57, %v796_v56 }
 0x1d4   : > { %622 = vmatpush1.bf16.msra.mxu0 %v545_v11  ;;  %v2060_v11 = vsub.f32 %v801_v62, %v797_v61  ;;  %p1504_p5 = pnand %p1503_p10, %p1497_p0 }
 0x1d5   : > { %623 = vmatprep.subr.bf16.mxu0 %v1617_v1 }
 0x1d6   : > { %v558_v12 = vpop.permute.xlu0 %557  ;;  %v556_v13 = vpop.permute.xlu1 %555 }
 0x1d7   : > { %v560_v14 = vsel %vm559_vm3, %v556_v13, %v558_v12 }
 0x1d8   : > { %624 = vmatpush1.bf16.msra.mxu0 %v560_v14 }
 0x1d9   : > { %625 = vmatprep.subr.bf16.mxu0 %v1617_v1 }
 0x1da   : > { %v565_v15 = vpop.permute.xlu0 %564  ;;  %v563_v16 = vpop.permute.xlu1 %562 }
 0x1db   : > { %v567_v17 = vsel %vm566_vm4, %v563_v16, %v565_v15  ;;  %v2062_v15 = vsub.f32 %v802_v3, %v798_v2 }
 0x1dc   : > { %626 = vmatpush1.bf16.msra.mxu0 %v567_v17 }
 0x1dd   : > { %627 = vmatprep.subr.bf16.mxu0 %v1617_v1 }
 0x1de   : > { %v580_v18 = vpop.permute.xlu0 %579  ;;  %v578_v19 = vpop.permute.xlu1 %577 }
 0x1df   : > { %v582_v20 = vsel %vm581_vm5, %v578_v19, %v580_v18  ;;  %v807_v18 = vmul.f32 0.5, %v2058_v8  ;;  %v808_v19 = vmul.f32 0.5, %v804_v9 }
 0x1e0   : > { %628 = vmatpush1.bf16.msra.mxu0 %v582_v20  ;;  %v811_v20 = vmul.f32 0.5, %v2060_v11 }
 0x1e3   : > { %644 = vmatmul.mubr.bf16.vlgmr.msra.gmra.mrb[0].mxu0 %v1302_v21 }
 0x1ef   : > { %v591_v23 = vpop.permute.xlu1 %590  ;;  %v596_v27 = vpop.permute.xlu0 %595 }
 0x1f3   : > { %v670_v36 = vpop.permute.xlu1 %669  ;;  %v685_v48 = vpop.permute.xlu0 %684 }
 0x1f7   : > { %v675_v40 = vpop.permute.xlu1 %674  ;;  %v695_v6 = vpop.permute.xlu0 %694 }
 0x1fb   : > { %v690_v59 = vpop.permute.xlu1 %689 }
 0x2b6   : > { %v645_v24 = vpop.f32.mrb[0].mxu0 }
 0x2b7   : > { %v646_v25 = vadd.f32 %v645_v24, %v591_v23  ;;  %v647_v26 = vpop.f32.mrb[1].mxu0  ;;  %v2070_v23 = vadd.f32 %v807_v18, %v795_v53  ;;  %v858_v24 = vrot.slane %v2058_v8, 5 }
 0x2b8   : > { %v648_v28 = vpop.f32.mrb[2].mxu0 }
 0x2b9   : > { %v649_v29 = vadd.f32 %v648_v28, %v596_v27  ;;  %v650_v30 = vpop.f32.mrb[3].mxu0  ;;  %v652_v1 = vmax.f32 %v646_v25, 0.0  ;;  %v2073_v25 = vadd.f32 %v808_v19, %v796_v56  ;;  %v2075_v27 = vadd.f32 %v811_v20, %v797_v61 }
 0x2ba   : > { %v819_v28 = vrot.slane %v804_v9, 7 }
 0x2bb   : > { %v653_v31 = vmax.f32 %v649_v29, 0.0  ;;  %v859_v29 = vrot.slane %v804_v9, 5 }
 0x2bd   : > { %v660_v32 = vpack.c.bf16 %v653_v31, %v652_v1  ;;  %v837_v1 = vrot.slane %v2060_v11, 6 }
 0x2bf   : > { %1162 = vmatpush3.bf16.msra.mxu1 %v660_v32  ;;  %v838_v32 = vrot.slane %v2062_v15, 6 }
 0x2c2   : > { %1164 = vmatmul.mubr.msk.bf16.vlgmr.msra.gmra.mrb[0].mxu1 %vm445_vm6, %v1305_v33  ;;  %v680_v33 = vpop.permute.xlu1 %679 }
 0x2c3   : > { %1167 = vmatprep.mubr.msk.bf16.mxu1 %vm1632_vm7, %v1631_v22 }
 0x2ca   : > { %1168 = vmatmul.mubr.msk.bf16.gmra.mrb[4].mxu1 %vm445_vm6, %v1306_v34  ;;  %v818_v34 = vrot.slane %v2058_v8, 7 }
 0x2cb   : > { %1171 = vmatprep.mubr.msk.bf16.mxu1 %vm1632_vm7, %v1631_v22  ;;  %v812_v22 = vmul.f32 0.5, %v2062_v15 }
 0x2cd   : > { %v2085_v31 = vadd.f32 %v812_v22, %v798_v2 }
 0x2d2   : > { %1172 = vmatmul.mubr.msk.bf16.gmra.mrb[8].mxu1 %vm445_vm6, %v1307_v35  ;;  %vm817_vm6 = vcmask 1040384   ;;  %v868_v35 = vrot.slane %v2060_v11, 4 }
 0x395   : > { %v755_v37 = vpop.f32.mrb[0].mxu1 }
 0x396   : > { %v756_v38 = vadd.f32 %v755_v37, %v670_v36  ;;  %v1165_v39 = vpop.f32.mrb[1].mxu1  ;;  %v869_v36 = vrot.slane %v2062_v15, 4 }
 0x397   : > { %v758_v41 = vpop.f32.mrb[2].mxu1 }
 0x398   : > { %v1149_v42 = vmul.f32 -1.442695, %v756_v38  ;;  %v2042_v43 = vadd.f32 %v758_v41, %v675_v40  ;;  %v1166_v44 = vpop.f32.mrb[3].mxu1  ;;  %v820_v40 = vsel %vm817_vm6, %v818_v34, %v819_v28  ;;  %v828_v41 = vrot.slane %v2073_v25, 7 }
 0x399   : > { %v846_v44 = vrot.slane %v2075_v27, 6 }
 0x39a   : > { %1308 = vpow2.f32 %v1149_v42  ;;  %v1150_v45 = vmul.f32 -1.442695, %v2042_v43  ;;  %v860_v42 = vsel %vm857_vm8, %v858_v24, %v859_v29 }
 0x39c   : > { %1310 = vpow2.f32 %v1150_v45  ;;  %v839_v45 = vsel %vm836_vm9, %v837_v1, %v838_v32 }
 0x39d   : > { %v2045_v46 = vpop.f32.mrb[4].mxu1 }
 0x39e   : > { %v1169_v47 = vpop.f32.mrb[5].mxu1  ;;  %v764_v38 = vadd.f32 %v2045_v46, %v680_v33 }
 0x39f   : > { %v766_v49 = vpop.f32.mrb[6].mxu1  ;;  %v847_v47 = vrot.slane %v2085_v31, 6 }
 0x3a0   : > { %v2047_v50 = vadd.f32 %v766_v49, %v685_v48  ;;  %v1170_v51 = vpop.f32.mrb[7].mxu1 }
 0x3a2   : > { %v792_v52 = vmin.f32 %v2047_v50, 4.1351666 }
 0x3a4   : > { %v1309_v55 = vpop.eup %1308  ;;  %v853_v58 = vmul.f32 1.442695, %v792_v52 }
 0x3a5   : > { %v784_v60 = vadd.f32 1.0, %v1309_v55  ;;  %v771_v63 = vpop.f32.mrb[8].mxu1 }
 0x3a6   : > { %v1311_v0 = vpop.eup %1310  ;;  %1312 = vpow2.f32 %v853_v58  ;;  %v772_v4 = vadd.f32 %v771_v63, %v690_v59  ;;  %v1173_v5 = vpop.f32.mrb[9].mxu1 }
 0x3a7   : > { %1314 = vrcp.f32 %v784_v60  ;;  %v785_v7 = vadd.f32 1.0, %v1311_v0  ;;  %v774_v10 = vpop.f32.mrb[10].mxu1 }
 0x3a8   : > { %v793_v12 = vmin.f32 %v772_v4, 4.1351666  ;;  %v775_v13 = vadd.f32 %v774_v10, %v695_v6  ;;  %v1174_v14 = vpop.f32.mrb[11].mxu1 }
 0x3a9   : > { %1316 = vrcp.f32 %v785_v7 }
 0x3aa   : > { %v855_v16 = vmul.f32 1.442695, %v793_v12  ;;  %v794_v17 = vmin.f32 %v775_v13, 4.1351666 }
 0x3ac   : > { %1318 = vpow2.f32 %v855_v16  ;;  %v865_v21 = vmul.f32 1.442695, %v794_v17 }
 0x3ae   : > { %1320 = vpow2.f32 %v865_v21 }
 0x3b0   : > { %v1313_v26 = vpop.eup %1312 }
 0x3b1   : > { %v1315_v30 = vpop.eup %1314  ;;  %v863_v39 = vmul.f32 %v1313_v26, %v858_v24 }
 0x3b2   : > { %790 = vst [vmem:[%s397_s10] sm:$0xff] %v1315_v30 }
 0x3b3   : > { %v1317_v37 = vpop.eup %1316 }
 0x3b4   : > { %791 = vst [vmem:[%s397_s10 + $0x8] sm:$0x1] %v1317_v37 }
 0x3b5   : > { %1507 = shalt.err (!%p1504_p5)
}
 0x3b6   : > { %s1508_s22 = scalar_lea.hbm %s2082_s23, 256  ;;  %s1512_s29 = scalar_lea.hbm %s2204_s6, 512 }
 0x3b7   : > { %p1509_p9 = scmp.ne.s32.totalorder %s2082_s23, %s1508_s22  ;;  %p1513_p7 = scmp.lt.u32.totalorder %s2082_s23, %s2204_s6 }
 0x3b8   : > { %p1514_p12 = scmp.lt.u32.totalorder %s1512_s29, %s1508_s22  ;;  %p1516_p2 = scmp.lt.u32.totalorder %s1508_s22, %s2082_s23 }
 0x3b9   : > { %p1510_p4 = pnand %p1509_p9, %p1853_p3 }
 0x3ba   : > { %p1515_p1 = por %p1514_p12, %p1513_p7 }
 0x3bb   : > { %p1511_p11 = pneg %p1510_p4 }
 0x3bc   : > { %p1517_p13 = por %p1516_p2, %p1515_p1 }
 0x3be   : > { %p1518_p0 = pnand %p1517_p13, %p1511_p11 }
 0x3c0   : > { %1521 = shalt.err (!%p1518_p0)
}
 0x3c1   : > { %s1634_s21 = smov 128   ;;  %s1635_s16 = smov 256   ;;  %v1319_v46 = vpop.eup %1318  ;;  %v827_v48 = vrot.slane %v2070_v23, 7  ;;  %v870_v49 = vsel %vm867_vm10, %v868_v35, %v869_v36  ;;  %v824_v51 = vmul.f32 %v820_v40, %v764_v38  ;;  %v875_v52 = vmul.f32 0.5, %v863_v39 }
 0x3c2   : > { %s1636_s3 = smov 8   ;;  %v864_v53 = vmul.f32 %v1319_v46, %v860_v42  ;;  %v873_v54 = vmul.f32 %v1319_v46, %v868_v35  ;;  %v1321_v55 = vpop.eup %1320  ;;  %v823_v56 = vmul.f32 %v818_v34, %v2042_v43  ;;  %v843_v58 = vmul.f32 %v839_v45, %v2047_v50  ;;  %s2149_s20 = scalar_lea.hbm %s2205_s7, %s1152_s1 }
 0x3c3   : > { %1197 = dma.vmem_to_hbm [thread:$0]  (%p1853_p3), %s2088_s30, 256, %s2082_s23, %s911_s13, %s1634_s21, %s1635_s16, %s1636_s3   ;;  %v829_v57 = vsel %vm817_vm6, %v827_v48, %v828_v41  ;;  %v848_v59 = vsel %vm836_vm9, %v846_v44, %v847_v47  ;;  %v874_v62 = vmul.f32 %v1321_v55, %v870_v49  ;;  %v842_v63 = vmul.f32 %v837_v1, %v764_v38 }
 0x3c4   : > { %v876_v60 = vmul.f32 0.5, %v864_v53  ;;  %v889_v61 = vmul.f32 0.5, %v873_v54  ;;  %vm879_vm11 = vcmask 1045504   ;;  %v833_v0 = vadd.f32 %v829_v57, %v824_v51  ;;  %s404_s30 = scalar_lea.vmem [#allocation14], %s1176_s9  ;;  %s916_s9 = scalar_lea.sflag [#allocation15], %s1949_s14 }
 0x3c5   : > { %v880_v2 = vrot.slane %v875_v52, 2  ;;  %v890_v43 = vmul.f32 0.5, %v874_v62  ;;  %v832_v4 = vadd.f32 %v827_v48, %v823_v56  ;;  %v852_v5 = vadd.f32 %v848_v59, %v843_v58  ;;  %s943_s23 = sshll.u32 %s404_s30, 4  ;;  %s1637_s1 = smov [#allocation14]   ;;  %s2151_s23 = int_to_ptr.vmem [resolvable:$true] %s943_s23 }
 0x3c6   : > { %v881_v3 = vrot.slane %v876_v60, 2  ;;  %v893_v50 = vrot.slane %v889_v61, 2  ;;  %v851_v10 = vadd.f32 %v846_v44, %v842_v63  ;;  %s1522_s28 = scalar_lea.vmem %s2151_s23, 640  ;;  %s1526_s19 = sshll.u32 %s1637_s1, 4  ;;  %s1527_s19 = int_to_ptr.vmem [resolvable:$false] %s1526_s19 }
 0x3c7   : > { %v894_v9 = vrot.slane %v890_v43, 2  ;;  %p1523_p6 = scmp.ne.s32.totalorder %s2151_s23, %s1522_s28  ;;  %s1528_s22 = scalar_lea.vmem %s1527_s19, 1280 }
 0x3c8   : > { %v882_v6 = vsel %vm879_vm11, %v880_v2, %v881_v3  ;;  %v886_v7 = vsub.f32 %v833_v0, %v881_v3  ;;  %v903_v8 = vadd.f32 %v881_v3, %v833_v0  ;;  %p1529_p5 = scmp.lt.s32.totalorder %s2151_s23, %s1527_s19  ;;  %p1530_p9 = scmp.lt.s32.totalorder %s1528_s22, %s1522_s28 }
 0x3c9   : > { %v885_v11 = vsub.f32 %v832_v4, %v882_v6  ;;  %v902_v12 = vadd.f32 %v882_v6, %v832_v4  ;;  %v895_v13 = vsel %vm879_vm11, %v893_v50, %v894_v9  ;;  %v899_v14 = vsub.f32 %v852_v5, %v894_v9  ;;  %p1524_p8 = pnand %p1523_p6, %p1853_p3 }
 0x3ca   : > { %888 = vst [vmem:[%s404_s30 + $0x7] sm:$0x3] %v886_v7  ;;  %905 = vst [vmem:[%s404_s30 + $0x19] sm:$0x3] %v903_v8  ;;  %v907_v15 = vadd.f32 %v894_v9, %v852_v5  ;;  %v898_v16 = vsub.f32 %v851_v10, %v895_v13  ;;  %v906_v17 = vadd.f32 %v895_v13, %v851_v10  ;;  %p1531_p4 = por %p1530_p9, %p1529_p5 }
 0x3cb   : > { %887 = vst [vmem:[%s404_s30 - $0x1] sm:$0xfe] %v885_v11  ;;  %904 = vst [vmem:[%s404_s30 + $0x11] sm:$0xfe] %v902_v12  ;;  %p1525_p10 = pneg %p1524_p8 }
 0x3cc   : > { %901 = vst [vmem:[%s404_s30 + $0xf] sm:$0x7] %v899_v14  ;;  %909 = vst [vmem:[%s404_s30 + $0x21] sm:$0x7] %v907_v15 }
 0x3cd   : > { %900 = vst [vmem:[%s404_s30 + $0x7] sm:$0xfc] %v898_v16  ;;  %908 = vst [vmem:[%s404_s30 + $0x19] sm:$0xfc] %v906_v17  ;;  %p1532_p11 = pnand %p1531_p4, %p1525_p10 }
 0x3cf   : > { %1535 = shalt.err (!%p1532_p11)
}
 0x3d0   : > { %s1536_s2 = scalar_lea.hbm %s2149_s20, 640  ;;  %s1540_s15 = scalar_lea.hbm %s2205_s7, 1280 }
 0x3d1   : > { %p1537_p7 = scmp.ne.s32.totalorder %s2149_s20, %s1536_s2  ;;  %p1541_p2 = scmp.lt.u32.totalorder %s2149_s20, %s2205_s7 }
 0x3d2   : > { %p1542_p13 = scmp.lt.u32.totalorder %s1540_s15, %s1536_s2  ;;  %p1544_p6 = scmp.lt.u32.totalorder %s1536_s2, %s2149_s20 }
 0x3d3   : > { %p1538_p12 = pnand %p1537_p7, %p1853_p3 }
 0x3d4   : > { %p1543_p0 = por %p1542_p13, %p1541_p2 }
 0x3d5   : > { %p1539_p1 = pneg %p1538_p12 }
 0x3d6   : > { %p1545_p8 = por %p1544_p6, %p1543_p0 }
 0x3d8   : > { %p1546_p10 = pnand %p1545_p8, %p1539_p1 }
 0x3da   : > { %1549 = shalt.err (!%p1546_p10)
}
 0x3db   : > { %1198 = dma.vmem_to_hbm [thread:$0]  (%p1853_p3), %s2151_s23, 640, %s2149_s20, %s916_s9, %s1634_s21, %s1635_s16, %s1636_s3  }
 0x3dc PF: > { %s958_s13 = sand.u32 1, %s1592_s24   ;;  %p2240_p5 = scmp.ne.s32.totalorder %s2218_s8, 0 }
 0x3dd   : > { %p2241_p9 = scmp.ge.s32.totalorder %s1604_s27, 2  ;;  %s959_s11 = scalar_lea.sflag [#allocation4], %s958_s13 }
 0x3df   : > { %p1222_p4 = pnand %p2241_p9, %p2240_p5 }
 0x3e1   : > { %1583 = dma.done.wait (!%p1222_p4), %s959_s11, 256  }
 0x3e2   : > { %1585 = vsyncadd (!%p1222_p4), %s959_s11, 4294967040  ;;  %s968_s18 = scalar_lea.sflag [#allocation15], %s958_s13 }
 0x3e3   : > { %1587 = dma.done.wait (!%p1222_p4), %s968_s18, 640  }
 0x3e4   : > { %1589 = vsyncadd (!%p1222_p4), %s968_s18, 4294966656  ;;  %p29_p3 = scmp.ge.s32.totalorder %s1840_s12, 4   ;;  %s2242_s24 = smov %s1596_s25 }
 0x3e5   : > { %s2243_s25 = smov %s1600_s26  ;;  %s2244_s26 = smov %s1849_s17 }
 0x3e6   : > { %s2245_s27 = smov %s1840_s12  ;;  %31 = sbr.rel (!%p29_p3) target bundleno = 16 (0x10), region = 135 }
 0x3ed   :  { %973 = vsyncpa [#allocation3], 1 }
 0x3ee   :  { %975 = vsyncpa [#allocation3 + $0x1], 1 }
 0x3ef   :  { %976 = vsyncpa [#allocation6], 1 }
 0x3f0   :  { %977 = vsyncpa [#allocation9], 1 }
 0x3f1   :  { %978 = vsyncpa [#allocation12], 1 }
 0x3f2   :  { %980 = vsyncpa [#allocation12 + $0x1], 1 }
 0x3f3   :  { %981 = vsyncpa [#allocation4], 1 }
 0x3f4   :  { %983 = vsyncpa [#allocation4 + $0x1], 1 }
 0x3f5   :  { %984 = vsyncpa [#allocation15], 1 }
 0x3f6   :  { %986 = vsyncpa [#allocation15 + $0x1], 1 }

</bundles_post_ra>
